<compile_context>
chip_gen: v6e
topology: v6e:2x2x1
jax: 0.10.0
libtpu: 0.0.40
codegen_flags: <defaults>
</compile_context>

<pallas_src>
import functools

import jax
import jax.numpy as jnp
from jax import lax
from jax.experimental import pallas as pl
from jax.experimental.pallas import tpu as pltpu

LN_EPS = 1e-5


def _round_up(a: int, b: int) -> int:
    return (a + b - 1) // b * b


def _audio_proj_kernel(x_ref, w_ref, g_ref, b_ref, o_ref, acc_ref):
    """x_ref: (tm, tk)  w_ref: (tk, D_out)  g/b_ref: (1, D_out)
       o_ref: (tm, D_out)  acc_ref: (tm, D_out) f32 scratch."""
    k = pl.program_id(1)

    @pl.when(k == 0)
    def _():
        acc_ref[...] = jnp.zeros_like(acc_ref)

    # Partial projection on the MXU; f32 accumulation.
    acc_ref[...] += jnp.dot(
        x_ref[...], w_ref[...], preferred_element_type=jnp.float32
    )

    @pl.when(k == pl.num_programs(1) - 1)
    def _():
        y = acc_ref[...]                      # (tm, D_out) f32
        n = y.shape[-1]
        inv_n = jnp.float32(1.0 / n)
        # Fused single-pass mean / variance (one sweep over the tile).
        s = jnp.sum(y, axis=-1, keepdims=True)
        ss = jnp.sum(y * y, axis=-1, keepdims=True)
        mean = s * inv_n
        var = ss * inv_n - mean * mean
        inv_std = lax.rsqrt(var + LN_EPS)     # EUP slot, ~free
        gamma = g_ref[...]                    # (1, D_out) — hoisted broadcasts
        beta = b_ref[...]
        o_ref[...] = ((y - mean) * inv_std * gamma + beta).astype(o_ref.dtype)


@functools.partial(
    jax.jit, static_argnames=("tile_m", "tile_k", "matmul_dtype")
)
def audio_proj_model(
    audio_embeds,
    proj_weight,
    ln_gamma,
    ln_beta,
    *,
    tile_m: int = 256,
    tile_k: int = 512,
    matmul_dtype=None,
):
    """audio_embeds: (B, T, D_in)
       proj_weight : (D_out, D_in)  (PyTorch Linear layout)
       ln_gamma/ln_beta: (D_out,)
       matmul_dtype: optionally jnp.bfloat16 to run MXU operands in bf16
                     (accumulation + LayerNorm remain f32).
       returns: (B, T, D_out), same dtype as audio_embeds."""
    B, T, D_in = audio_embeds.shape
    D_out = proj_weight.shape[0]
    M = B * T
    out_dtype = audio_embeds.dtype

    # Pre-transpose the weight ONCE (outside the kernel): (D_out, D_in) -> (D_in, D_out).
    w_t = jnp.transpose(proj_weight, (1, 0))

    x2d = audio_embeds.reshape(M, D_in)
    if matmul_dtype is not None:
        x2d = x2d.astype(matmul_dtype)
        w_t = w_t.astype(matmul_dtype)

    # Effective tiles: clamp for small problems, keep (8, 128) alignment.
    tm = min(tile_m, _round_up(M, 8))
    tk = min(tile_k, _round_up(D_in, 128))

    m_pad = _round_up(M, tm)
    k_pad = _round_up(D_in, tk)

    if m_pad != M or k_pad != D_in:
        x2d = jnp.pad(x2d, ((0, m_pad - M), (0, k_pad - D_in)))
    if k_pad != D_in:
        w_t = jnp.pad(w_t, ((0, k_pad - D_in), (0, 0)))

    gamma2d = ln_gamma.reshape(1, D_out).astype(jnp.float32)
    beta2d = ln_beta.reshape(1, D_out).astype(jnp.float32)

    grid = (m_pad // tm, k_pad // tk)

    # Explicit VMEM budget (double-buffered inputs/outputs + f32 accumulator).
    in_isz = jnp.dtype(x2d.dtype).itemsize
    out_isz = jnp.dtype(out_dtype).itemsize
    vmem_bytes = (
        2 * tm * tk * in_isz          # x tile (double buffered)
        + 2 * tk * D_out * in_isz     # weight tile (double buffered)
        + 2 * tm * D_out * out_isz    # output tile (double buffered)
        + tm * D_out * 4              # f32 accumulator scratch
        + 4 * D_out * 4               # gamma / beta
    )
    vmem_limit = int(min(max(vmem_bytes + (4 << 20), 32 << 20), 96 << 20))

    cost = pl.CostEstimate(
        flops=2 * M * D_in * D_out,
        transcendentals=M,
        bytes_accessed=(
            M * D_in * in_isz + D_in * D_out * in_isz + M * D_out * out_isz
        ),
    )

    out2d = pl.pallas_call(
        _audio_proj_kernel,
        out_shape=jax.ShapeDtypeStruct((m_pad, D_out), out_dtype),
        grid_spec=pltpu.PrefetchScalarGridSpec(
            num_scalar_prefetch=0,
            grid=grid,
            in_specs=[
                pl.BlockSpec((tm, tk), lambda i, k: (i, k)),       # x row/K tile
                pl.BlockSpec((tk, D_out), lambda i, k: (k, 0)),    # weight K tile
                pl.BlockSpec((1, D_out), lambda i, k: (0, 0)),     # gamma
                pl.BlockSpec((1, D_out), lambda i, k: (0, 0)),     # beta
            ],
            out_specs=pl.BlockSpec((tm, D_out), lambda i, k: (i, 0)),
            scratch_shapes=[pltpu.VMEM((tm, D_out), jnp.float32)],
        ),
        compiler_params=pltpu.CompilerParams(
            dimension_semantics=("parallel", "arbitrary"),
            vmem_limit_bytes=vmem_limit,
        ),
        cost_estimate=cost,
    )(x2d, w_t, gamma2d, beta2d)

    return out2d[:M].reshape(B, T, D_out)


def _reference(audio_embeds, proj_weight, ln_gamma, ln_beta):
    y = jnp.einsum(
        "btd,od->bto", audio_embeds, proj_weight, preferred_element_type=jnp.float32
    )
    mean = jnp.mean(y, axis=-1, keepdims=True)
    var = jnp.mean((y - mean) ** 2, axis=-1, keepdims=True)
    return (y - mean) / jnp.sqrt(var + LN_EPS) * ln_gamma + ln_beta


if __name__ == "__main__":
    # Small, module-consistent shapes (audio_in_dim / cross_attention_dim scaled
    # down from 1024, kept TPU lane-aligned).  D_in=256 with tile_k=128 also
    # exercises the K-reduction / accumulator path.
    B, T = 2, 8
    audio_in_dim = 256
    cross_attention_dim = 128

    key = jax.random.PRNGKey(0)
    k_x, k_w = jax.random.split(key)

    audio_embeds = jax.random.normal(k_x, (B, T, audio_in_dim), dtype=jnp.float32)
    proj_weight = jax.random.normal(
        k_w, (cross_attention_dim, audio_in_dim), dtype=jnp.float32
    ) * (1.0 / jnp.sqrt(audio_in_dim))
    ln_gamma = jnp.ones((cross_attention_dim,), dtype=jnp.float32)
    ln_beta = jnp.zeros((cross_attention_dim,), dtype=jnp.float32)

    ref = _reference(audio_embeds, proj_weight, ln_gamma, ln_beta)

    # f32 matmul path (tight tolerance vs reference).
    out = audio_proj_model(
        audio_embeds, proj_weight, ln_gamma, ln_beta, tile_m=256, tile_k=128
    )
    out = jax.block_until_ready(out)
    assert out.shape == (B, T, cross_attention_dim)
    assert jnp.allclose(out, ref, atol=1e-4, rtol=1e-4), "f32 path mismatch"

    # bf16-operand matmul path (v6e/v7x recommendation); LayerNorm stays f32.
    out_bf16 = audio_proj_model(
        audio_embeds,
        proj_weight,
        ln_gamma,
        ln_beta,
        tile_m=256,
        tile_k=128,
        matmul_dtype=jnp.bfloat16,
    )
    out_bf16 = jax.block_until_ready(out_bf16)
    assert jnp.allclose(out_bf16, ref, atol=5e-2, rtol=5e-2), "bf16 path mismatch"

    print("KERNEL_OK")
</pallas_src>

<mosaic_0001>
module attributes {stable_mosaic.version = 11 : i64} {
  func.func @_audio_proj_kernel(%arg0: i32, %arg1: i32, %arg2: memref<16x128xf32, #tpu.memory_space<vmem>>, %arg3: memref<128x128xf32, #tpu.memory_space<vmem>>, %arg4: memref<1x128xf32, #tpu.memory_space<vmem>>, %arg5: memref<1x128xf32, #tpu.memory_space<vmem>>, %arg6: memref<16x128xf32, #tpu.memory_space<vmem>>, %arg7: memref<16x128xf32, #tpu.memory_space<vmem>>) attributes {dimension_semantics = [#tpu.dimension_semantics<parallel>, #tpu.dimension_semantics<arbitrary>], iteration_bounds = array<i64: 1, 2>, scalar_prefetch = 0 : i64, scratch_operands = 1 : i64, tpu.core_type = #tpu.core_type<tc>, window_params = [{transform_indices = @transform_0, window_bounds = array<i64: 16, 128>}, {transform_indices = @transform_1, window_bounds = array<i64: 128, 128>}, {pipeline_mode = #tpu.pipeline_mode<synchronous>, transform_indices = @transform_2, window_bounds = array<i64: 1, 128>}, {pipeline_mode = #tpu.pipeline_mode<synchronous>, transform_indices = @transform_3, window_bounds = array<i64: 1, 128>}, {transform_indices = @transform_4, window_bounds = array<i64: 16, 128>}]} {
    %c0_i32 = arith.constant 0 : i32
    %0 = arith.cmpi eq, %arg1, %c0_i32 : i32
    %1 = arith.extui %0 : i1 to i32
    %c0_i32_0 = arith.constant 0 : i32
    %2 = arith.cmpi ne, %1, %c0_i32_0 : i32
    scf.if %2 {
      %cst_9 = arith.constant 0.000000e+00 : f32
      %12 = vector.broadcast %cst_9 : f32 to vector<16x128xf32>
      %c0_10 = arith.constant 0 : index
      %c0_11 = arith.constant 0 : index
      %13 = vector.load %arg7[%c0_10, %c0_11] : memref<16x128xf32, #tpu.memory_space<vmem>>, vector<16x128xf32>
      tpu.vector_store %arg7[%c0_10, %c0_11], %12 {strides = array<i32>} : memref<16x128xf32, #tpu.memory_space<vmem>>, vector<16x128xf32>,
    } else {
    }
    %c0 = arith.constant 0 : index
    %c0_1 = arith.constant 0 : index
    %3 = vector.load %arg7[%c0, %c0_1] : memref<16x128xf32, #tpu.memory_space<vmem>>, vector<16x128xf32>
    %c0_2 = arith.constant 0 : index
    %c0_3 = arith.constant 0 : index
    %4 = vector.load %arg2[%c0_2, %c0_3] : memref<16x128xf32, #tpu.memory_space<vmem>>, vector<16x128xf32>
    %c0_4 = arith.constant 0 : index
    %c0_5 = arith.constant 0 : index
    %5 = vector.load %arg3[%c0_4, %c0_5] : memref<128x128xf32, #tpu.memory_space<vmem>>, vector<128x128xf32>
    %cst = arith.constant dense<0.000000e+00> : vector<16x128xf32>
    %6 = tpu.matmul %4, %5, %cst {dimension_numbers = #tpu.dot_dimension_numbers<[1], [0], [0], [1], [0, 0, 1, 1], [], []>} : vector<16x128xf32>, vector<128x128xf32>, vector<16x128xf32> -> vector<16x128xf32>
    %7 = arith.addf %3, %6 : vector<16x128xf32>
    %c0_6 = arith.constant 0 : index
    %c0_7 = arith.constant 0 : index
    %8 = vector.load %arg7[%c0_6, %c0_7] : memref<16x128xf32, #tpu.memory_space<vmem>>, vector<16x128xf32>
    tpu.vector_store %arg7[%c0_6, %c0_7], %7 {strides = array<i32>} : memref<16x128xf32, #tpu.memory_space<vmem>>, vector<16x128xf32>,
    %c1_i32 = arith.constant 1 : i32
    %9 = arith.cmpi eq, %arg1, %c1_i32 : i32
    %10 = arith.extui %9 : i1 to i32
    %c0_i32_8 = arith.constant 0 : i32
    %11 = arith.cmpi ne, %10, %c0_i32_8 : i32
    scf.if %11 {
      %c0_9 = arith.constant 0 : index
      %c0_10 = arith.constant 0 : index
      %12 = vector.load %arg7[%c0_9, %c0_10] : memref<16x128xf32, #tpu.memory_space<vmem>>, vector<16x128xf32>
      %cst_11 = arith.constant dense<0.000000e+00> : vector<16xf32>
      %13 = vector.multi_reduction <add>, %12, %cst_11 [1] : vector<16x128xf32> to vector<16xf32>
      %14 = vector.shape_cast %13 : vector<16xf32> to vector<16x1xf32>
      %15 = arith.mulf %12, %12 : vector<16x128xf32>
      %cst_12 = arith.constant dense<0.000000e+00> : vector<16xf32>
      %16 = vector.multi_reduction <add>, %15, %cst_12 [1] : vector<16x128xf32> to vector<16xf32>
      %17 = vector.shape_cast %16 : vector<16xf32> to vector<16x1xf32>
      %cst_13 = arith.constant 7.812500e-03 : f32
      %18 = vector.broadcast %cst_13 : f32 to vector<16x1xf32>
      %19 = arith.mulf %14, %18 : vector<16x1xf32>
      %cst_14 = arith.constant 7.812500e-03 : f32
      %20 = vector.broadcast %cst_14 : f32 to vector<16x1xf32>
      %21 = arith.mulf %17, %20 : vector<16x1xf32>
      %22 = arith.mulf %19, %19 : vector<16x1xf32>
      %23 = arith.subf %21, %22 : vector<16x1xf32>
      %cst_15 = arith.constant 9.99999974E-6 : f32
      %24 = vector.broadcast %cst_15 : f32 to vector<16x1xf32>
      %25 = arith.addf %23, %24 : vector<16x1xf32>
      %26 = math.rsqrt %25 : vector<16x1xf32>
      %c0_16 = arith.constant 0 : index
      %c0_17 = arith.constant 0 : index
      %27 = vector.load %arg4[%c0_16, %c0_17] : memref<1x128xf32, #tpu.memory_space<vmem>>, vector<1x128xf32>
      %c0_18 = arith.constant 0 : index
      %c0_19 = arith.constant 0 : index
      %28 = vector.load %arg5[%c0_18, %c0_19] : memref<1x128xf32, #tpu.memory_space<vmem>>, vector<1x128xf32>
      %29 = vector.broadcast %19 : vector<16x1xf32> to vector<16x128xf32>
      %30 = arith.subf %12, %29 : vector<16x128xf32>
      %31 = vector.broadcast %26 : vector<16x1xf32> to vector<16x128xf32>
      %32 = arith.mulf %30, %31 : vector<16x128xf32>
      %33 = vector.broadcast %27 : vector<1x128xf32> to vector<16x128xf32>
      %34 = arith.mulf %32, %33 : vector<16x128xf32>
      %35 = vector.broadcast %28 : vector<1x128xf32> to vector<16x128xf32>
      %36 = arith.addf %34, %35 : vector<16x128xf32>
      %c0_20 = arith.constant 0 : index
      %c0_21 = arith.constant 0 : index
      %37 = vector.load %arg6[%c0_20, %c0_21] : memref<16x128xf32, #tpu.memory_space<vmem>>, vector<16x128xf32>
      tpu.vector_store %arg6[%c0_20, %c0_21], %36 {strides = array<i32>} : memref<16x128xf32, #tpu.memory_space<vmem>>, vector<16x128xf32>,
    } else {
    }
    return
  }
  func.func @transform_0(%arg0: i32, %arg1: i32) -> (i32, i32) {
    %c0_i32 = arith.constant 0 : i32
    return %arg0, %arg1 : i32, i32
  }
  func.func @transform_1(%arg0: i32, %arg1: i32) -> (i32, i32) {
    %c0_i32 = arith.constant 0 : i32
    %c0_i32_0 = arith.constant 0 : i32
    return %arg1, %c0_i32 : i32, i32
  }
  func.func @transform_2(%arg0: i32, %arg1: i32) -> (i32, i32) {
    %c0_i32 = arith.constant 0 : i32
    %c0_i32_0 = arith.constant 0 : i32
    %c0_i32_1 = arith.constant 0 : i32
    return %c0_i32, %c0_i32_0 : i32, i32
  }
  func.func @transform_3(%arg0: i32, %arg1: i32) -> (i32, i32) {
    %c0_i32 = arith.constant 0 : i32
    %c0_i32_0 = arith.constant 0 : i32
    %c0_i32_1 = arith.constant 0 : i32
    return %c0_i32, %c0_i32_0 : i32, i32
  }
  func.func @transform_4(%arg0: i32, %arg1: i32) -> (i32, i32) {
    %c0_i32 = arith.constant 0 : i32
    %c0_i32_0 = arith.constant 0 : i32
    return %arg0, %c0_i32 : i32, i32
  }
}

</mosaic_0001>

<bundles_post_ra>
// kernel: audio_proj_model.1
= control target key start
LH: loop header
LB: loop body
LE: loop exit
PB: predicated region body
PF: predicated region fallthrough
CT: control target
= control target key end

     0   :  { %9 = vsyncpa [#allocation5], 0  ;;  %s729_s15 = smov 0   ;;  %s731_s16 = smov 0   ;;  %s845_s0 = inlined_call_operand.vmem [shape: f32[16,256], index: 0, kind: input, shape index: {}]   ;;  %s846_s1 = inlined_call_operand.vmem [shape: f32[256,128], index: 1, kind: input, shape index: {}]   ;;  %s847_s2 = inlined_call_operand.vmem [shape: f32[1,128], index: 2, kind: input, shape index: {}]   ;;  %s848_s3 = inlined_call_operand.vmem [shape: f32[1,128], index: 3, kind: input, shape index: {}]   ;;  %s849_s4 = inlined_call_operand.hbm [shape: f32[16,128], index: 4, kind: output, shape index: {}]  }
   0x1   :  { %s733_s17 = smov 0   ;;  %s735_s18 = smov 0  }
   0x2   :  { %s737_s19 = smov 0  }
   0x3 LB: > { %s508_s20 = sadd.s32 4294967295, %s698_s19   ;;  %s24_s21 = sadd.s32 1, %s694_s18  ;;  %s698_s19 = sphi %s737_s19, %s15_s19   ;;  %s694_s18 = sphi %s735_s18, %s854_s18   ;;  %s690_s17 = sphi %s733_s17, %s853_s17   ;;  %s686_s16 = sphi %s731_s16, %s852_s16   ;;  %s682_s15 = sphi %s729_s15, %s851_s15  }
   0x4   : > { %p25_p0 = scmp.ge.s32.totalorder %s24_s21, 2  ;;  %p43_p1 = scmp.ne.s32.totalorder %s686_s16, %s682_s15 }
   0x5   : > { %p44_p2 = scmp.eq.s32.totalorder %s698_s19, 0  ;;  %s36_s23 = sadd.s32 1, %s686_s16 }
   0x6   : > { %s856_s21 = smov (%p25_p0, %s24_s21), 0  ;;  %p510_p5 = scmp.ge.s32.totalorder %s698_s19, 2 }
   0x7   : > { %p45_p3 = por %p44_p2, %p43_p1  ;;  %s32_s22 = ssub.s32 %s694_s18, %s856_s21 }
   0x8   : > { %p34_p4 = scmp.eq.s32.totalorder %s32_s22, 0  ;;  %169 = sbr.rel (%p510_p5) target bundleno = 18 (0x12), region = 24 }
   0xa   : > { %s765_s24 = scalar_select %p34_p4, %s686_s16, %s36_s23  }
   0xd   : > { %172 = sbr.rel (!%p45_p3) target bundleno = 18 (0x12), region = 28  ;;  %s174_s25 = sand.u32 (%p45_p3), 1, %s686_s16  }
   0xe   : > { %s512_s26 = sshll.u32 (%p45_p3), %s694_s18, 3  ;;  %s511_s27 = sshll.u32 (%p45_p3), %s174_s25, 4 }
   0xf   : > { %s181_s30 = scalar_lea.vmem (%p45_p3), %s845_s0, %s512_s26  ;;  %s176_s5 = scalar_lea.vmem (%p45_p3), [#allocation3], %s511_s27 }
  0x10   : > { %v212_v0 = vld [vmem:[%s181_s30] sm:$0xff] (%p45_p3)  ;;  %v214_v1 = vld [vmem:[%s181_s30 + $0x10] sm:$0xff] (%p45_p3) }
  0x11   : > { %213 = vst [vmem:[%s176_s5] sm:$0xff] (%p45_p3), %v212_v0  ;;  %215 = vst [vmem:[%s176_s5 + $0x8] sm:$0xff] (%p45_p3), %v214_v1 }
  0x12 PF: > { %p513_p6 = scmp.ge.s32.totalorder %s698_s19, 1  ;;  %p229_p7 = scmp.lt.s32.totalorder %s698_s19, 3 }
  0x14   : > { %p230_p8 = pnand %p513_p6, %p229_p7 }
  0x15   : > { %s236_s6 = sand.u32 (!%p230_p8), 1, %s682_s15   ;;  %s515_s7 = sshll.u32 (!%p230_p8), %s690_s17, 4 }
  0x16   : > { %233 = sbr.rel (%p230_p8) target bundleno = 459 (0x1cb), region = 70  ;;  %s777_s8 = sshll.u32 (!%p230_p8), %s236_s6, 4 }
  0x17   : > { %p263_p9 = scmp.lt.s32.totalorder (!%p230_p8), %s515_s7, 31  ;;  %s238_s13 = scalar_lea.vmem (!%p230_p8), [#allocation3], %s777_s8 }
  0x18   : > { %p517_p10 = scmp.ne.s32.totalorder (!%p230_p8), %s690_s17, 0 }
  0x1b   : > { %s858_s7 = smov (!%p263_p9, %s515_s7), 31  ;;  %272 = sbr.rel (%p517_p10) target bundleno = 34 (0x22), region = 78 }
  0x1c   : > { %s516_s9 = sshll.u32 %s858_s7, 3 }
  0x1d   : > { %s782_s12 = scalar_lea.vmem %s846_s1, %s516_s9 }
  0x20   : > { %v700_v2 = vmov 0.0  }
  0x21   : > { %273 = vst [vmem:[#allocation2] sm:$0xff] %v700_v2  ;;  %274 = vst [vmem:[#allocation2 + $0x8] sm:$0xff] %v700_v2 }
  0x22 PF: > { %v294_v3 = vld [vmem:[%s782_s12 + $0x78] sm:$0xff]  ;;  %v293_v4 = vld [vmem:[%s782_s12 + $0x70] sm:$0xff]  ;;  %v292_v5 = vld [vmem:[%s782_s12 + $0x68] sm:$0xff]  ;;  %p518_p11 = scmp.ne.s32.totalorder %s690_s17, 1 }
  0x23   : > { %543 = vmatprep.subr.mxu0 %v294_v3  ;;  %v291_v6 = vld [vmem:[%s782_s12 + $0x60] sm:$0xff]  ;;  %v290_v8 = vld [vmem:[%s782_s12 + $0x58] sm:$0xff]  ;;  %v289_v9 = vld [vmem:[%s782_s12 + $0x50] sm:$0xff] }
  0x24   : > { %544 = vmatpush3.msra.mxu0 %v294_v3  ;;  %v277_v7 = vld [vmem:[%s238_s13] sm:$0xff]  ;;  %v288_v10 = vld [vmem:[%s782_s12 + $0x48] sm:$0xff]  ;;  %v286_v12 = vld [vmem:[%s782_s12 + $0x38] sm:$0xff] }
  0x25   : > { %545 = vmatprep.subr.mxu0 %v293_v4  ;;  %575 = vmatprep.mubr.f32.mxu0 %v277_v7  ;;  %v287_v11 = vld [vmem:[%s782_s12 + $0x40] sm:$0xff]  ;;  %v285_v13 = vld [vmem:[%s782_s12 + $0x30] sm:$0xff]  ;;  %v284_v14 = vld [vmem:[%s782_s12 + $0x28] sm:$0xff] }
  0x26   : > { %546 = vmatpush3.msra.mxu0 %v293_v4  ;;  %v283_v15 = vld [vmem:[%s782_s12 + $0x20] sm:$0xff]  ;;  %v282_v16 = vld [vmem:[%s782_s12 + $0x18] sm:$0xff]  ;;  %v281_v17 = vld [vmem:[%s782_s12 + $0x10] sm:$0xff] }
  0x27   : > { %547 = vmatprep.subr.mxu0 %v292_v5  ;;  %v280_v18 = vld [vmem:[%s782_s12 + $0x8] sm:$0xff]  ;;  %v279_v19 = vld [vmem:[%s782_s12] sm:$0xff] }
  0x28   : > { %548 = vmatpush3.msra.mxu0 %v292_v5  ;;  %v278_v20 = vld [vmem:[%s238_s13 + $0x8] sm:$0xff]  ;;  %v275_v23 = vld [vmem:[#allocation2] sm:$0xff] }
  0x29   : > { %549 = vmatprep.subr.mxu0 %v291_v6  ;;  %v276_v21 = vld [vmem:[#allocation2 + $0x8] sm:$0xff] }
  0x2a   : > { %550 = vmatpush3.msra.mxu0 %v291_v6 }
  0x2b   : > { %551 = vmatprep.subr.mxu0 %v290_v8 }
  0x2c   : > { %552 = vmatpush3.msra.mxu0 %v290_v8 }
  0x2d   : > { %553 = vmatprep.subr.mxu0 %v289_v9 }
  0x2e   : > { %554 = vmatpush3.msra.mxu0 %v289_v9 }
  0x2f   : > { %555 = vmatprep.subr.mxu0 %v288_v10 }
  0x30   : > { %556 = vmatpush3.msra.mxu0 %v288_v10 }
  0x31   : > { %557 = vmatprep.subr.mxu0 %v287_v11 }
  0x32   : > { %558 = vmatpush3.msra.mxu0 %v287_v11 }
  0x33   : > { %559 = vmatprep.subr.mxu0 %v286_v12 }
  0x34   : > { %560 = vmatpush3.msra.mxu0 %v286_v12 }
  0x35   : > { %561 = vmatprep.subr.mxu0 %v285_v13 }
  0x36   : > { %562 = vmatpush3.msra.mxu0 %v285_v13 }
  0x37   : > { %563 = vmatprep.subr.mxu0 %v284_v14 }
  0x38   : > { %564 = vmatpush3.msra.mxu0 %v284_v14 }
  0x39   : > { %565 = vmatprep.subr.mxu0 %v283_v15 }
  0x3a   : > { %566 = vmatpush3.msra.mxu0 %v283_v15 }
  0x3b   : > { %567 = vmatprep.subr.mxu0 %v282_v16 }
  0x3c   : > { %568 = vmatpush3.msra.mxu0 %v282_v16 }
  0x3d   : > { %569 = vmatprep.subr.mxu0 %v281_v17 }
  0x3e   : > { %570 = vmatpush3.msra.mxu0 %v281_v17 }
  0x3f   : > { %571 = vmatprep.subr.mxu0 %v280_v18 }
  0x40   : > { %572 = vmatpush3.msra.mxu0 %v280_v18 }
  0x41   : > { %573 = vmatprep.subr.mxu0 %v279_v19 }
  0x42   : > { %574 = vmatpush3.msra.mxu0 %v279_v19 }
  0x43   : > { %576 = vmatmul.mubr.f32.vlgmr.msra.gmra.mxu0 %v278_v20 }
 0x103   : > { %v577_v22 = vpop.f32.mrf.mxu0 }
 0x104   : > { %v371_v24 = vadd.f32 %v577_v22, %v276_v21  ;;  %377 = sbr.rel (%p518_p11) target bundleno = 443 (0x1bb), region = 82 }
 0x105   : > { %v361_v25 = vpop.f32.mrf.mxu0 }
 0x106   : > { %373 = vst [vmem:[#allocation2 + $0x8] sm:$0xff] %v371_v24  ;;  %v370_v26 = vadd.f32 %v361_v25, %v275_v23 }
 0x108   : > { %372 = vst [vmem:[#allocation2] sm:$0xff] %v370_v26 }
 0x109   : > { %v519_v47 = vld [vmem:[%s847_s2] ss:$0 sm:$0xff] }
 0x10a   : > { %v520_v49 = vld [vmem:[%s848_s3] ss:$0 sm:$0xff] }
 0x10d   : > { %v379_v28 = vld [vmem:[#allocation2 + $0x8] sm:$0xff] }
 0x10e   : > { %v385_v30 = vmul.f32 %v379_v28, %v379_v28 }
 0x10f   : > { %v378_v27 = vld [vmem:[#allocation2] sm:$0xff] }
 0x110   : > { %380 = vadd.xlane.f32.xlu0 %v378_v27  ;;  %v384_v29 = vmul.f32 %v378_v27, %v378_v27 }
 0x112   : > { %386 = vadd.xlane.f32.xlu1 %v384_v29 }
 0x114   : > { %382 = vadd.xlane.f32.xlu0 %v379_v28 }
 0x116   : > { %388 = vadd.xlane.f32.xlu1 %v385_v30 }
 0x199   : > { %v381_v31 = vpop.xlane.xlu0 %380 }
 0x19a   : > { %v390_v32 = vmul.f32 0.0078125, %v381_v31 }
 0x19b   : > { %v387_v33 = vpop.xlane.xlu1 %386 }
 0x19c   : > { %v394_v34 = vmul.f32 %v390_v32, %v390_v32  ;;  %v392_v35 = vmul.f32 0.0078125, %v387_v33  ;;  %v404_v45 = vsub.f32 %v378_v27, %v390_v32 }
 0x19d   : > { %v383_v36 = vpop.xlane.xlu0 %382 }
 0x19e   : > { %v396_v37 = vsub.f32 %v392_v35, %v394_v34  ;;  %v391_v38 = vmul.f32 0.0078125, %v383_v36 }
 0x19f   : > { %v389_v39 = vpop.xlane.xlu1 %388 }
 0x1a0   : > { %v398_v40 = vadd.f32 1e-05, %v396_v37  ;;  %v395_v41 = vmul.f32 %v391_v38, %v391_v38  ;;  %v393_v42 = vmul.f32 0.0078125, %v389_v39  ;;  %v405_v51 = vsub.f32 %v379_v28, %v391_v38 }
 0x1a2   : > { %628 = vrsqrt.f32 %v398_v40  ;;  %v397_v43 = vsub.f32 %v393_v42, %v395_v41 }
 0x1a4   : > { %v399_v44 = vadd.f32 1e-05, %v397_v43 }
 0x1a6   : > { %630 = vrsqrt.f32 %v399_v44 }
 0x1af   : > { %v629_v46 = vpop.eup %628 }
 0x1b0   : > { %v406_v48 = vmul.f32 %v629_v46, %v404_v45 }
 0x1b2   : > { %v414_v50 = vmul.f32 %v519_v47, %v406_v48 }
 0x1b3   : > { %v631_v52 = vpop.eup %630 }
 0x1b4   : > { %v422_v53 = vadd.f32 %v520_v49, %v414_v50  ;;  %v407_v54 = vmul.f32 %v631_v52, %v405_v51 }
 0x1b6   : > { %424 = vst [vmem:[#allocation4] sm:$0xff] %v422_v53  ;;  %v415_v55 = vmul.f32 %v519_v47, %v407_v54 }
 0x1b8   : > { %v423_v56 = vadd.f32 %v520_v49, %v415_v55 }
 0x1ba   : > { %425 = vst [vmem:[#allocation4 + $0x8] sm:$0xff] %v423_v56 }
 0x1bb PF: > { %p815_p12 = scmp.eq.s32.totalorder %s508_s20, 1  ;;  %s701_s25 = smov [#allocation4]  }
 0x1bc   : > { %s435_s26 = sshll.u32 %s701_s25, 4  ;;  %s436_s26 = int_to_ptr.vmem [resolvable:$true] %s435_s26 }
 0x1bd   : > { %s632_s27 = scalar_lea.vmem %s436_s26, 256  ;;  %p639_p2 = scmp.lt.s32.totalorder %s436_s26, %s436_s26 }
 0x1be   : > { %p633_p13 = scmp.ne.s32.totalorder %s436_s26, %s632_s27  ;;  %p640_p3 = scmp.lt.s32.totalorder %s632_s27, %s632_s27 }
 0x1c0   : > { %p634_p0 = pnand %p633_p13, %p815_p12  ;;  %p641_p4 = por %p640_p3, %p639_p2 }
 0x1c2   : > { %p635_p1 = pneg %p634_p0 }
 0x1c4   : > { %p642_p5 = pnand %p641_p4, %p635_p1 }
 0x1c6   : > { %645 = shalt.err (!%p642_p5)
}
 0x1c7   : > { %s702_s28 = smov 128   ;;  %s703_s20 = smov 8  }
 0x1c8   : > { %579 = dma.vmem_to_hbm [thread:$0]  (%p815_p12), %s436_s26, 256, %s849_s4, [#allocation5], %s702_s28, %s702_s28, %s703_s20  }
 0x1c9   : > { %677 = dma.done.wait (%p815_p12), [#allocation5], 256  }
 0x1ca   : > { %679 = vsyncadd (%p815_p12), [#allocation5], 4294967040 }
 0x1cb PF: > { %s15_s19 = sadd.s32 1, %s698_s19   ;;  %s851_s15 = smov %s686_s16 }
 0x1cc   : > { %p12_p6 = scmp.ge.s32.totalorder %s15_s19, 4   ;;  %s852_s16 = smov %s765_s24 }
 0x1cd   : > { %s853_s17 = smov %s694_s18  ;;  %s854_s18 = smov %s856_s21 }
 0x1ce   :  { %14 = sbr.rel (!%p12_p6) target bundleno = 3 (0x3), region = 118 }
 0x1d3   :  { %451 = vsyncpa [#allocation5], 1 }
 0x1d4   :  { %453 = vsyncpa [#allocation5 + $0x1], 1 }

</bundles_post_ra>
